<compile_context>
chip_gen: v5e
topology: v5e:2x2
jax: 0.10.0
libtpu: 0.0.40
codegen_flags: <defaults>
</compile_context>

<pallas_src>
import math
import functools

import jax
import jax.numpy as jnp
from jax.experimental import pallas as pl
from jax.experimental.pallas import tpu as pltpu


def attn_kernel(q_ref, k_ref, v_ref, mask_ref,
                wq_ref, wk_ref, wv_ref, vecs_ref,
                o_ref, *, B, N, F, Fp):
    # Packed (8, Fp) parameter vectors: bq, bk, bv, g1, b1, g2, b2, (unused row).
    vecs = vecs_ref[...]
    bq, bk, bv = vecs[0:1, :], vecs[1:2, :], vecs[2:3, :]
    g1, b1 = vecs[3:4, :], vecs[4:5, :]
    g2, b2 = vecs[5:6, :], vecs[6:7, :]

    # QKV projections: three small bf16 MXU dots (contraction over the real K=F,
    # Mosaic pads the contraction internally). Weight cols >= F are zero, so the
    # padded output lanes of qh/kh/vh are exactly zero.
    xq = q_ref[...].astype(jnp.bfloat16)
    xk = k_ref[...].astype(jnp.bfloat16)
    xv = v_ref[...].astype(jnp.bfloat16)
    qh = jnp.dot(xq, wq_ref[...], preferred_element_type=jnp.float32) + bq  # (B*N, Fp)
    kh = jnp.dot(xk, wk_ref[...], preferred_element_type=jnp.float32) + bk
    vh = jnp.dot(xv, wv_ref[...], preferred_element_type=jnp.float32) + bv

    qb = qh.reshape(B, N, Fp)
    kb = kh.reshape(B, N, Fp)
    vb = vh.reshape(B, N, Fp)

    # Scaled dot-product attention; contraction over last dims (no transpose).
    # NOTE: scale is intentionally not folded into Wq/bq — the unscaled qh is
    # reused for the LayerNorm residual below. One tiny VPU multiply instead.
    scale = 1.0 / math.sqrt(float(F))
    attn = jnp.einsum('bqd,bkd->bqk', qb, kb,
                      preferred_element_type=jnp.float32) * scale
    attn = attn + mask_ref[...][None, :, :]
    attn = attn - jnp.max(attn, axis=-1, keepdims=True)
    p = jnp.exp(attn)
    w = p * pl.reciprocal(jnp.sum(p, axis=-1, keepdims=True), approx=True)
    # TODO(synk): self.dropout is the eval-mode identity here (no RNG masking).

    out = jnp.einsum('bqk,bkd->bqd', w, vb,
                     preferred_element_type=jnp.float32).reshape(B * N, Fp)

    # LayerNorm over the F real features only; lanes >= F are zero padding and
    # stay exactly zero (gamma/beta padded lanes are zero as well).
    lane = jax.lax.broadcasted_iota(jnp.int32, (1, Fp), 1)
    valid = lane < F
    inv_f = 1.0 / float(F)

    def layernorm(xx, gamma, beta, eps=1e-5):
        mu = jnp.sum(xx, axis=-1, keepdims=True) * inv_f          # pads contribute 0
        xc = jnp.where(valid, xx - mu, 0.0)
        var = jnp.sum(xc * xc, axis=-1, keepdims=True) * inv_f    # biased, torch default
        return xc * jax.lax.rsqrt(var + eps) * gamma + beta

    out = layernorm(out + qh, g1, b1)
    out = layernorm(out + kh, g2, b2)
    out = out + vh

    o_ref[...] = out                                              # lane-dense (B*N, Fp)


def prepare_params(params, F):
    """One-time parameter prep (runs at init, NOT on every forward call)."""
    Fp = 128 * pl.cdiv(F, 128)                 # lane-dense feature width (>= 128)

    def pad_w(w_t):   # (F, F) -> (F, Fp): output-side zero pad, bf16 MXU datapath
        return jnp.pad(w_t, ((0, 0), (0, Fp - F))).astype(jnp.bfloat16)

    def pad_v(x):     # (1, F) -> (1, Fp)
        return jnp.pad(x, ((0, 0), (0, Fp - F)))

    vecs = jnp.concatenate(
        [pad_v(params["bq"]), pad_v(params["bk"]), pad_v(params["bv"]),
         pad_v(params["g1"]), pad_v(params["b1"]),
         pad_v(params["g2"]), pad_v(params["b2"]),
         jnp.zeros((1, Fp), jnp.float32)], axis=0)                # (8, Fp)

    return {
        "Fp": Fp,
        "wq": pad_w(params["wq_t"]),
        "wk": pad_w(params["wk_t"]),
        "wv": pad_w(params["wv_t"]),
        "vecs": vecs,
    }


def model_forward(q, k, v, attn_mask, prepped):
    B, N, F = q.shape
    Fp = int(prepped["Fp"])
    assert attn_mask.shape == (N, N)

    # Only free (contiguous) reshapes per call — no pads / concats in the wrapper.
    q2 = q.reshape(B * N, F)
    k2 = k.reshape(B * N, F)
    v2 = v.reshape(B * N, F)

    flops = (3 * 2 * (B * N) * F * Fp          # projections
             + 2 * 2 * B * N * N * Fp          # q.k^T and w@v
             + 12 * B * N * Fp)                # layernorms / residuals (approx)
    transcendentals = B * N * N + 3 * B * N    # exp + reciprocal/rsqrt
    bytes_accessed = (3 * B * N * F * 4 + N * N * 4        # q,k,v, mask
                      + 3 * F * Fp * 2 + 8 * Fp * 4        # bf16 weights + packed vecs
                      + B * N * Fp * 4)                    # output

    kernel = functools.partial(attn_kernel, B=B, N=N, F=F, Fp=Fp)
    out = pl.pallas_call(
        kernel,
        out_shape=jax.ShapeDtypeStruct((B * N, Fp), jnp.float32),
        in_specs=[pl.BlockSpec(memory_space=pltpu.MemorySpace.VMEM)
                  for _ in range(8)],
        out_specs=pl.BlockSpec(memory_space=pltpu.MemorySpace.VMEM),
        cost_estimate=pl.CostEstimate(flops=flops,
                                      transcendentals=transcendentals,
                                      bytes_accessed=bytes_accessed),
    )(q2, k2, v2, attn_mask,
      prepped["wq"], prepped["wk"], prepped["wv"], prepped["vecs"])

    # Final module layout is 'b n h d' with h = 1; drop the lane padding.
    return out[:, :F].reshape(B, N, 1, F)


def init_params(key, F):
    """Deterministic init mimicking torch.nn.Linear / LayerNorm defaults."""
    ks = jax.random.split(key, 6)
    bound = 1.0 / math.sqrt(F)
    u = lambda k_, shape: jax.random.uniform(k_, shape, jnp.float32, -bound, bound)
    return {
        # store transposed weights: y = x @ W^T + b  ->  x @ wq_t + b
        "wq_t": u(ks[0], (F, F)).T, "bq": u(ks[1], (1, F)),
        "wk_t": u(ks[2], (F, F)).T, "bk": u(ks[3], (1, F)),
        "wv_t": u(ks[4], (F, F)).T, "bv": u(ks[5], (1, F)),
        "g1": jnp.ones((1, F), jnp.float32), "b1": jnp.zeros((1, F), jnp.float32),
        "g2": jnp.ones((1, F), jnp.float32), "b2": jnp.zeros((1, F), jnp.float32),
    }


if __name__ == "__main__":
    B, N, F = 2, 8, 32   # batch, seq_len, feature_size (h = 1, d = F)

    root = jax.random.PRNGKey(0)
    kq, kk, kv, km, kp = jax.random.split(root, 5)
    q = jax.random.normal(kq, (B, N, F), jnp.float32)
    k = jax.random.normal(kk, (B, N, F), jnp.float32)
    v = jax.random.normal(kv, (B, N, F), jnp.float32)
    attn_mask = jax.random.normal(km, (N, N), jnp.float32)

    params = init_params(kp, F)
    prepped = prepare_params(params, F)        # one-time padding / packing / bf16 cast

    out = model_forward(q, k, v, attn_mask, prepped)
    jax.block_until_ready(out)
    assert out.shape == (B, N, 1, F)
    print("KERNEL_OK")
</pallas_src>

<mosaic_0001>
module attributes {stable_mosaic.version = 11 : i64} {
  func.func @attn_kernel(%arg0: memref<16x32xf32, #tpu.memory_space<vmem>>, %arg1: memref<16x32xf32, #tpu.memory_space<vmem>>, %arg2: memref<16x32xf32, #tpu.memory_space<vmem>>, %arg3: memref<8x8xf32, #tpu.memory_space<vmem>>, %arg4: memref<32x128xbf16, #tpu.memory_space<vmem>>, %arg5: memref<32x128xbf16, #tpu.memory_space<vmem>>, %arg6: memref<32x128xbf16, #tpu.memory_space<vmem>>, %arg7: memref<8x128xf32, #tpu.memory_space<vmem>>, %arg8: memref<16x128xf32, #tpu.memory_space<vmem>>) attributes {dimension_semantics = [], scalar_prefetch = 0 : i64, scratch_operands = 0 : i64, tpu.core_type = #tpu.core_type<tc>} {
    %c0 = arith.constant 0 : index
    %c0_0 = arith.constant 0 : index
    %0 = vector.load %arg7[%c0, %c0_0] : memref<8x128xf32, #tpu.memory_space<vmem>>, vector<8x128xf32>
    %1 = vector.extract_strided_slice %0 {offsets = [0, 0], sizes = [1, 128], strides = [1, 1]} : vector<8x128xf32> to vector<1x128xf32>
    %2 = vector.extract_strided_slice %0 {offsets = [1, 0], sizes = [1, 128], strides = [1, 1]} : vector<8x128xf32> to vector<1x128xf32>
    %3 = vector.extract_strided_slice %0 {offsets = [2, 0], sizes = [1, 128], strides = [1, 1]} : vector<8x128xf32> to vector<1x128xf32>
    %4 = vector.extract_strided_slice %0 {offsets = [3, 0], sizes = [1, 128], strides = [1, 1]} : vector<8x128xf32> to vector<1x128xf32>
    %5 = vector.extract_strided_slice %0 {offsets = [4, 0], sizes = [1, 128], strides = [1, 1]} : vector<8x128xf32> to vector<1x128xf32>
    %6 = vector.extract_strided_slice %0 {offsets = [5, 0], sizes = [1, 128], strides = [1, 1]} : vector<8x128xf32> to vector<1x128xf32>
    %7 = vector.extract_strided_slice %0 {offsets = [6, 0], sizes = [1, 128], strides = [1, 1]} : vector<8x128xf32> to vector<1x128xf32>
    %c0_1 = arith.constant 0 : index
    %c0_2 = arith.constant 0 : index
    %8 = vector.load %arg0[%c0_1, %c0_2] : memref<16x32xf32, #tpu.memory_space<vmem>>, vector<16x32xf32>
    %9 = arith.truncf %8 : vector<16x32xf32> to vector<16x32xbf16>
    %c0_3 = arith.constant 0 : index
    %c0_4 = arith.constant 0 : index
    %10 = vector.load %arg1[%c0_3, %c0_4] : memref<16x32xf32, #tpu.memory_space<vmem>>, vector<16x32xf32>
    %11 = arith.truncf %10 : vector<16x32xf32> to vector<16x32xbf16>
    %c0_5 = arith.constant 0 : index
    %c0_6 = arith.constant 0 : index
    %12 = vector.load %arg2[%c0_5, %c0_6] : memref<16x32xf32, #tpu.memory_space<vmem>>, vector<16x32xf32>
    %13 = arith.truncf %12 : vector<16x32xf32> to vector<16x32xbf16>
    %c0_7 = arith.constant 0 : index
    %c0_8 = arith.constant 0 : index
    %14 = vector.load %arg4[%c0_7, %c0_8] : memref<32x128xbf16, #tpu.memory_space<vmem>>, vector<32x128xbf16>
    %cst = arith.constant dense<0.000000e+00> : vector<16x128xf32>
    %15 = tpu.matmul %9, %14, %cst {dimension_numbers = #tpu.dot_dimension_numbers<[1], [0], [0], [1], [0, 0, 1, 1], [], []>} : vector<16x32xbf16>, vector<32x128xbf16>, vector<16x128xf32> -> vector<16x128xf32>
    %16 = vector.broadcast %1 : vector<1x128xf32> to vector<16x128xf32>
    %17 = arith.addf %15, %16 : vector<16x128xf32>
    %c0_9 = arith.constant 0 : index
    %c0_10 = arith.constant 0 : index
    %18 = vector.load %arg5[%c0_9, %c0_10] : memref<32x128xbf16, #tpu.memory_space<vmem>>, vector<32x128xbf16>
    %cst_11 = arith.constant dense<0.000000e+00> : vector<16x128xf32>
    %19 = tpu.matmul %11, %18, %cst_11 {dimension_numbers = #tpu.dot_dimension_numbers<[1], [0], [0], [1], [0, 0, 1, 1], [], []>} : vector<16x32xbf16>, vector<32x128xbf16>, vector<16x128xf32> -> vector<16x128xf32>
    %20 = vector.broadcast %2 : vector<1x128xf32> to vector<16x128xf32>
    %21 = arith.addf %19, %20 : vector<16x128xf32>
    %c0_12 = arith.constant 0 : index
    %c0_13 = arith.constant 0 : index
    %22 = vector.load %arg6[%c0_12, %c0_13] : memref<32x128xbf16, #tpu.memory_space<vmem>>, vector<32x128xbf16>
    %cst_14 = arith.constant dense<0.000000e+00> : vector<16x128xf32>
    %23 = tpu.matmul %13, %22, %cst_14 {dimension_numbers = #tpu.dot_dimension_numbers<[1], [0], [0], [1], [0, 0, 1, 1], [], []>} : vector<16x32xbf16>, vector<32x128xbf16>, vector<16x128xf32> -> vector<16x128xf32>
    %24 = vector.broadcast %3 : vector<1x128xf32> to vector<16x128xf32>
    %25 = arith.addf %23, %24 : vector<16x128xf32>
    %26 = vector.shape_cast %17 : vector<16x128xf32> to vector<2x8x128xf32>
    %27 = vector.shape_cast %21 : vector<16x128xf32> to vector<2x8x128xf32>
    %28 = vector.shape_cast %25 : vector<16x128xf32> to vector<2x8x128xf32>
    "tpu.trace_start"() <{level = 10 : i32, message = "bqd,bkd->bqk"}> : () -> ()
    %cst_15 = arith.constant dense<0.000000e+00> : vector<2x8x8xf32>
    %29 = tpu.matmul %26, %27, %cst_15 {dimension_numbers = #tpu.dot_dimension_numbers<[2], [2], [1], [1], [0, 0, 0, 1, 1, 1], [0], [0]>} : vector<2x8x128xf32>, vector<2x8x128xf32>, vector<2x8x8xf32> -> vector<2x8x8xf32>
    "tpu.trace_stop"() : () -> ()
    %cst_16 = arith.constant 0.176776692 : f32
    %30 = vector.broadcast %cst_16 : f32 to vector<2x8x8xf32>
    %31 = arith.mulf %29, %30 : vector<2x8x8xf32>
    %c0_17 = arith.constant 0 : index
    %c0_18 = arith.constant 0 : index
    %32 = vector.load %arg3[%c0_17, %c0_18] : memref<8x8xf32, #tpu.memory_space<vmem>>, vector<8x8xf32>
    %33 = vector.shape_cast %32 : vector<8x8xf32> to vector<1x8x8xf32>
    %34 = vector.broadcast %33 : vector<1x8x8xf32> to vector<2x8x8xf32>
    %35 = arith.addf %31, %34 : vector<2x8x8xf32>
    %cst_19 = arith.constant dense<0xFF800000> : vector<2x8xf32>
    %36 = vector.multi_reduction <maximumf>, %35, %cst_19 [2] : vector<2x8x8xf32> to vector<2x8xf32>
    %37 = vector.shape_cast %36 : vector<2x8xf32> to vector<2x8x1xf32>
    %38 = vector.broadcast %37 : vector<2x8x1xf32> to vector<2x8x8xf32>
    %39 = arith.subf %35, %38 : vector<2x8x8xf32>
    %40 = math.exp %39 : vector<2x8x8xf32>
    %cst_20 = arith.constant dense<0.000000e+00> : vector<2x8xf32>
    %41 = vector.multi_reduction <add>, %40, %cst_20 [2] : vector<2x8x8xf32> to vector<2x8xf32>
    %42 = vector.shape_cast %41 : vector<2x8xf32> to vector<2x8x1xf32>
    %43 = tpu.reciprocal %42 {approx = true} : vector<2x8x1xf32> -> vector<2x8x1xf32>
    %44 = vector.broadcast %43 : vector<2x8x1xf32> to vector<2x8x8xf32>
    %45 = arith.mulf %40, %44 : vector<2x8x8xf32>
    "tpu.trace_start"() <{level = 10 : i32, message = "bqk,bkd->bqd"}> : () -> ()
    %cst_21 = arith.constant dense<0.000000e+00> : vector<2x8x128xf32>
    %46 = tpu.matmul %45, %28, %cst_21 {dimension_numbers = #tpu.dot_dimension_numbers<[2], [1], [1], [2], [0, 0, 0, 1, 1, 2], [0], [0]>} : vector<2x8x8xf32>, vector<2x8x128xf32>, vector<2x8x128xf32> -> vector<2x8x128xf32>
    "tpu.trace_stop"() : () -> ()
    %47 = vector.shape_cast %46 : vector<2x8x128xf32> to vector<16x128xf32>
    %48 = tpu.iota {dimensions = array<i32: 1>} : vector<1x128xi32>
    %c32_i32 = arith.constant 32 : i32
    %49 = vector.broadcast %c32_i32 : i32 to vector<1x128xi32>
    %50 = arith.cmpi slt, %48, %49 : vector<1x128xi32>
    %51 = arith.addf %47, %17 : vector<16x128xf32>
    %cst_22 = arith.constant dense<0.000000e+00> : vector<16xf32>
    %52 = vector.multi_reduction <add>, %51, %cst_22 [1] : vector<16x128xf32> to vector<16xf32>
    %53 = vector.shape_cast %52 : vector<16xf32> to vector<16x1xf32>
    %cst_23 = arith.constant 3.125000e-02 : f32
    %54 = vector.broadcast %cst_23 : f32 to vector<16x1xf32>
    %55 = arith.mulf %53, %54 : vector<16x1xf32>
    %56 = vector.broadcast %55 : vector<16x1xf32> to vector<16x128xf32>
    %57 = arith.subf %51, %56 : vector<16x128xf32>
    %cst_24 = arith.constant 0.000000e+00 : f32
    %58 = vector.shape_cast %50 : vector<1x128xi1> to vector<1x128xi1>
    %59 = vector.broadcast %58 : vector<1x128xi1> to vector<16x128xi1>
    %60 = vector.broadcast %cst_24 : f32 to vector<16x128xf32>
    %61 = arith.select %59, %57, %60 : vector<16x128xi1>, vector<16x128xf32>
    %62 = arith.mulf %61, %61 : vector<16x128xf32>
    %cst_25 = arith.constant dense<0.000000e+00> : vector<16xf32>
    %63 = vector.multi_reduction <add>, %62, %cst_25 [1] : vector<16x128xf32> to vector<16xf32>
    %64 = vector.shape_cast %63 : vector<16xf32> to vector<16x1xf32>
    %cst_26 = arith.constant 3.125000e-02 : f32
    %65 = vector.broadcast %cst_26 : f32 to vector<16x1xf32>
    %66 = arith.mulf %64, %65 : vector<16x1xf32>
    %cst_27 = arith.constant 9.99999974E-6 : f32
    %67 = vector.broadcast %cst_27 : f32 to vector<16x1xf32>
    %68 = arith.addf %66, %67 : vector<16x1xf32>
    %69 = math.rsqrt %68 : vector<16x1xf32>
    %70 = vector.broadcast %69 : vector<16x1xf32> to vector<16x128xf32>
    %71 = arith.mulf %61, %70 : vector<16x128xf32>
    %72 = vector.broadcast %4 : vector<1x128xf32> to vector<16x128xf32>
    %73 = arith.mulf %71, %72 : vector<16x128xf32>
    %74 = vector.broadcast %5 : vector<1x128xf32> to vector<16x128xf32>
    %75 = arith.addf %73, %74 : vector<16x128xf32>
    %76 = arith.addf %75, %21 : vector<16x128xf32>
    %cst_28 = arith.constant dense<0.000000e+00> : vector<16xf32>
    %77 = vector.multi_reduction <add>, %76, %cst_28 [1] : vector<16x128xf32> to vector<16xf32>
    %78 = vector.shape_cast %77 : vector<16xf32> to vector<16x1xf32>
    %cst_29 = arith.constant 3.125000e-02 : f32
    %79 = vector.broadcast %cst_29 : f32 to vector<16x1xf32>
    %80 = arith.mulf %78, %79 : vector<16x1xf32>
    %81 = vector.broadcast %80 : vector<16x1xf32> to vector<16x128xf32>
    %82 = arith.subf %76, %81 : vector<16x128xf32>
    %cst_30 = arith.constant 0.000000e+00 : f32
    %83 = vector.shape_cast %50 : vector<1x128xi1> to vector<1x128xi1>
    %84 = vector.broadcast %83 : vector<1x128xi1> to vector<16x128xi1>
    %85 = vector.broadcast %cst_30 : f32 to vector<16x128xf32>
    %86 = arith.select %84, %82, %85 : vector<16x128xi1>, vector<16x128xf32>
    %87 = arith.mulf %86, %86 : vector<16x128xf32>
    %cst_31 = arith.constant dense<0.000000e+00> : vector<16xf32>
    %88 = vector.multi_reduction <add>, %87, %cst_31 [1] : vector<16x128xf32> to vector<16xf32>
    %89 = vector.shape_cast %88 : vector<16xf32> to vector<16x1xf32>
    %cst_32 = arith.constant 3.125000e-02 : f32
    %90 = vector.broadcast %cst_32 : f32 to vector<16x1xf32>
    %91 = arith.mulf %89, %90 : vector<16x1xf32>
    %cst_33 = arith.constant 9.99999974E-6 : f32
    %92 = vector.broadcast %cst_33 : f32 to vector<16x1xf32>
    %93 = arith.addf %91, %92 : vector<16x1xf32>
    %94 = math.rsqrt %93 : vector<16x1xf32>
    %95 = vector.broadcast %94 : vector<16x1xf32> to vector<16x128xf32>
    %96 = arith.mulf %86, %95 : vector<16x128xf32>
    %97 = vector.broadcast %6 : vector<1x128xf32> to vector<16x128xf32>
    %98 = arith.mulf %96, %97 : vector<16x128xf32>
    %99 = vector.broadcast %7 : vector<1x128xf32> to vector<16x128xf32>
    %100 = arith.addf %98, %99 : vector<16x128xf32>
    %101 = arith.addf %100, %25 : vector<16x128xf32>
    %c0_34 = arith.constant 0 : index
    %c0_35 = arith.constant 0 : index
    %102 = vector.load %arg8[%c0_34, %c0_35] : memref<16x128xf32, #tpu.memory_space<vmem>>, vector<16x128xf32>
    tpu.vector_store %arg8[%c0_34, %c0_35], %101 {strides = array<i32>} : memref<16x128xf32, #tpu.memory_space<vmem>>, vector<16x128xf32>,
    return
  }
}

</mosaic_0001>

<bundles_post_ra>
// kernel: tpu_custom_call.1
= control target key start
LH: loop header
LB: loop body
LE: loop exit
PB: predicated region body
PF: predicated region fallthrough
CT: control target
= control target key end

     0   :  { %13 = vsyncpa [#allocation3], 0  ;;  %s954_s0 = inlined_call_operand.hbm [shape: f32[16,32], index: 0, kind: input, shape index: {}]   ;;  %s955_s1 = inlined_call_operand.hbm [shape: f32[16,32], index: 1, kind: input, shape index: {}]   ;;  %s956_s2 = inlined_call_operand.hbm [shape: f32[16,32], index: 2, kind: input, shape index: {}]   ;;  %s957_s3 = inlined_call_operand.hbm [shape: f32[8,8], index: 3, kind: input, shape index: {}]   ;;  %s958_s4 = inlined_call_operand.hbm [shape: bf16[32,128], index: 4, kind: input, shape index: {}]   ;;  %s959_s5 = inlined_call_operand.hbm [shape: bf16[32,128], index: 5, kind: input, shape index: {}]   ;;  %s960_s6 = inlined_call_operand.hbm [shape: bf16[32,128], index: 6, kind: input, shape index: {}]   ;;  %s961_s7 = inlined_call_operand.hbm [shape: f32[8,128], index: 7, kind: input, shape index: {}]   ;;  %s962_s8 = inlined_call_operand.hbm [shape: f32[16,128], index: 8, kind: output, shape index: {}]  }
   0x1   :  { %14 = vsyncpa [#allocation6], 0 }
   0x2   :  { %15 = vsyncpa [#allocation9], 0 }
   0x3   :  { %16 = vsyncpa [#allocation12], 0 }
   0x4   :  { %17 = vsyncpa [#allocation15], 0 }
   0x5   :  { %18 = vsyncpa [#allocation4], 0  ;;  %s36_s29 = sshll.u32 %s955_s1, 4  ;;  %s803_s30 = smov [#allocation5]   ;;  %s37_s29 = int_to_ptr.hbm [resolvable:$true] %s36_s29 }
   0x6   :  { %s38_s9 = sshll.u32 %s803_s30, 4  ;;  %s63_s12 = sshll.u32 %s957_s3, 4  ;;  %s39_s9 = int_to_ptr.vmem [resolvable:$true] %s38_s9  ;;  %s64_s12 = int_to_ptr.hbm [resolvable:$true] %s63_s12 }
   0x7   :  { %s804_s13 = smov 128   ;;  %s805_s14 = smov 8  }
   0x8   :  { %44 = dma.hbm_to_vmem [thread:$0]  %s37_s29, 256, %s39_s9, [#allocation6], %s804_s13, %s804_s13, %s805_s14  }
   0x9   :  { %s806_s15 = smov [#allocation8]   ;;  %s86_s18 = sshll.u32 %s959_s5, 4  ;;  %s87_s18 = int_to_ptr.hbm [resolvable:$true] %s86_s18 }
   0xa   :  { %s65_s16 = sshll.u32 %s806_s15, 4  ;;  %s807_s19 = smov [#allocation11]   ;;  %s66_s16 = int_to_ptr.vmem [resolvable:$true] %s65_s16 }
   0xb   :  { %68 = dma.hbm_to_vmem [thread:$0]  %s64_s12, 128, %s66_s16, [#allocation9]  }
   0xc   :  { %s88_s20 = sshll.u32 %s807_s19, 4  ;;  %s23_s22 = sshll.u32 %s954_s0, 4  ;;  %s89_s20 = int_to_ptr.vmem [resolvable:$true] %s88_s20  ;;  %s24_s22 = int_to_ptr.hbm [resolvable:$true] %s23_s22 }
   0xd   :  { %s808_s23 = smov 64   ;;  %s809_s24 = smov 4  }
   0xe   :  { %94 = dma.hbm_to_vmem [thread:$0]  %s87_s18, 256, %s89_s20, [#allocation12], %s808_s23, %s808_s23, %s809_s24  }
   0xf   :  { %s810_s25 = smov [#allocation2]   ;;  %s49_s5 = sshll.u32 %s956_s2, 4  ;;  %s50_s5 = int_to_ptr.hbm [resolvable:$true] %s49_s5 }
  0x10   :  { %s25_s26 = sshll.u32 %s810_s25, 4  ;;  %s73_s30 = sshll.u32 %s958_s4, 4  ;;  %s26_s26 = int_to_ptr.vmem [resolvable:$true] %s25_s26  ;;  %s74_s30 = int_to_ptr.hbm [resolvable:$true] %s73_s30 }
  0x11   :  { %31 = dma.hbm_to_vmem [thread:$0]  %s24_s22, 256, %s26_s26, [#allocation3], %s804_s13, %s804_s13, %s805_s14  }
  0x12   :  { %s811_s9 = smov [#allocation7]   ;;  %s812_s11 = smov [#allocation10]  }
  0x13   :  { %s51_s10 = sshll.u32 %s811_s9, 4  ;;  %s75_s2 = sshll.u32 %s812_s11, 4  ;;  %s52_s10 = int_to_ptr.vmem [resolvable:$true] %s51_s10  ;;  %s76_s2 = int_to_ptr.vmem [resolvable:$true] %s75_s2 }
  0x14   :  { %57 = dma.hbm_to_vmem [thread:$0]  %s50_s5, 256, %s52_s10, [#allocation6], %s804_s13, %s804_s13, %s805_s14  }
  0x15   :  { %s99_s16 = sshll.u32 %s960_s6, 4  ;;  %s113_s17 = sshll.u32 %s961_s7, 4  ;;  %s100_s16 = int_to_ptr.hbm [resolvable:$true] %s99_s16  ;;  %s114_s17 = int_to_ptr.hbm [resolvable:$true] %s113_s17 }
  0x16   :  { %81 = dma.hbm_to_vmem [thread:$0]  %s74_s30, 256, %s76_s2, [#allocation9], %s808_s23, %s808_s23, %s809_s24  }
  0x17   :  { %s813_s18 = smov [#allocation13]   ;;  %s814_s20 = smov [#allocation14]  }
  0x18   :  { %s101_s19 = sshll.u32 %s813_s18, 4  ;;  %s115_s6 = sshll.u32 %s814_s20, 4  ;;  %s102_s19 = int_to_ptr.vmem [resolvable:$true] %s101_s19  ;;  %s116_s6 = int_to_ptr.vmem [resolvable:$true] %s115_s6 }
  0x19   :  { %107 = dma.hbm_to_vmem [thread:$0]  %s100_s16, 256, %s102_s19, [#allocation12], %s808_s23, %s808_s23, %s809_s24  }
  0x1a   :  { %118 = dma.hbm_to_vmem [thread:$0]  %s114_s17, 128, %s116_s6, [#allocation15]  }
  0x1b   :  { %791 = dma.done.wait [#allocation3], 256  }
  0x1c   :  { %792 = vsyncadd [#allocation3], 4294967040 }
  0x1d   :  { %793 = dma.done.wait [#allocation6], 512  }
  0x1e   :  { %794 = vsyncadd [#allocation6], 4294966784 }
  0x1f   :  { %795 = dma.done.wait [#allocation9], 384  }
  0x20   :  { %796 = vsyncadd [#allocation9], 4294966912 }
  0x21   :  { %797 = dma.done.wait [#allocation12], 512  }
  0x22   :  { %798 = vsyncadd [#allocation12], 4294966784 }
  0x23   :  { %799 = dma.done.wait [#allocation15], 128  }
  0x24   :  { %800 = vsyncadd [#allocation15], 4294967168  ;;  %v541_v0 = vld [vmem:[#allocation10 + $0x8] sm:$0xff]  ;;  %v543_v1 = vld [vmem:[#allocation11 + $0x8] sm:$0xff]  ;;  %vm179_vm0 = vcmask 261120   ;;  %vm310_vm1 = vcmask 64512   ;;  %v379_v60 = vlaneseq }
  0x25   :  { %v540_v2 = vld [vmem:[#allocation10] sm:$0xff]  ;;  %v542_v3 = vld [vmem:[#allocation11] sm:$0xff]  ;;  %v153_v4 = vld [vmem:[#allocation2] sm:$0xff]  ;;  %189 = vmatpush.bf16.msra.mxu0 %v541_v0  ;;  %223 = vmatpush.bf16.msra.mxu1 %v543_v1  ;;  %s815_s7 = smov [#allocation16]   ;;  %s494_s23 = sshll.u32 %s962_s8, 4  ;;  %s495_s23 = int_to_ptr.hbm [resolvable:$true] %s494_s23 }
  0x26   :  { %v154_v5 = vld [vmem:[#allocation2 + $0x8] sm:$0xff]  ;;  %v156_v6 = vld [vmem:[#allocation5] sm:$0xff]  ;;  %v157_v7 = vld [vmem:[#allocation5 + $0x8] sm:$0xff]  ;;  %v929_v61 = vand.u32 127, %v379_v60  ;;  %s492_s3 = sshll.u32 %s815_s7, 4  ;;  %s493_s3 = int_to_ptr.vmem [resolvable:$true] %s492_s3 }
  0x27   :  { %v155_v8 = vpack.c.bf16 %v154_v5, %v153_v4  ;;  %v158_v9 = vpack.c.bf16 %v157_v7, %v156_v6  ;;  %v905_v10 = vld [vmem:[#allocation14] sm:$0xff]  ;;  %v545_v21 = vld [vmem:[#allocation13 + $0x8] sm:$0xff]  ;;  %v544_v22 = vld [vmem:[#allocation13] sm:$0xff] }
  0x28   :  { %v201_v11 = vperm.slane %v905_v10, 1  ;;  %v166_v12 = vperm.slane %v905_v10, 0  ;;  %257 = vmatpush.bf16.msra.mxu2 %v545_v21  ;;  %v159_v23 = vld [vmem:[#allocation7] sm:$0xff]  ;;  %v160_v24 = vld [vmem:[#allocation7 + $0x8] sm:$0xff]  ;;  %v307_v27 = vld [vmem:[#allocation8] sm:$0xff]  ;;  %v235_v35 = vperm.slane %v905_v10, 2 }
  0x29   :  { %190 = vmatpush.bf16.msra.mxu0 %v540_v2  ;;  %224 = vmatpush.bf16.msra.mxu1 %v542_v3  ;;  %v161_v25 = vpack.c.bf16 %v160_v24, %v159_v23  ;;  %vm381_vm2 = vcmp.lt.s32.totalorder %v929_v61, 32 }
  0x2c   :  { %519 = vmatmul.msk.bf16.vlgmr.msra.gmra.mxu0 %vm179_vm0, %v155_v8  ;;  %528 = vmatmul.msk.bf16.vlgmr.msra.gmra.mxu1 %vm179_vm0, %v158_v9 }
  0x2d   :  { %258 = vmatpush.bf16.msra.mxu2 %v544_v22 }
  0x30   :  { %537 = vmatmul.msk.bf16.vlgmr.msra.gmra.mxu2 %vm179_vm0, %v161_v25  ;;  %v428_v25 = vperm.slane %v905_v10, 3 }
  0xa9   :  { %v192_v13 = vpop.f32.mrf.mxu0  ;;  %v226_v14 = vpop.f32.mrf.mxu1 }
  0xaa   :  { %v909_v15 = vadd.f32 %v226_v14, %v201_v11  ;;  %v193_v16 = vadd.f32 %v192_v13, %v166_v12 }
  0xac   :  { %280 = vmatpush.xpose.msra.mxu3 %v909_v15 }
  0xaf   :  { %281 = vmatmul.f32.vlgmr.msra.gmra.mxu3 %v193_v16 }
  0xb1   :  { %v228_v17 = vpop.f32.mrf.mxu1  ;;  %v194_v18 = vpop.f32.mrf.mxu0 }
  0xb2   :  { %v912_v19 = vadd.f32 %v228_v17, %v201_v11  ;;  %v195_v20 = vadd.f32 %v194_v18, %v166_v12 }
  0xb3   :  { %v260_v38 = vpop.f32.mrf.mxu2 }
  0xb4   :  { %300 = vmatpush.xpose.msrb.mxu3 %v912_v19  ;;  %v919_v39 = vadd.f32 %v260_v38, %v235_v35 }
  0xb7   :  { %301 = vmatmul.f32.vlgmr.msrb.gmra.mxu3 %v195_v20 }
  0xb8   :  { %351 = vmatpush.msra.mxu3 %v919_v39 }
  0xbb   :  { %v262_v43 = vpop.f32.mrf.mxu2 }
  0xbc   :  { %v922_v44 = vadd.f32 %v262_v43, %v235_v35 }
  0xbe   :  { %374 = vmatpush.msrb.mxu0 %v922_v44 }
 0x132   :  { %v282_v26 = vpop.f32.mrf.mxu3 }
 0x133   :  { %v305_v28 = vmul.f32 0.17677669, %v282_v26 }
 0x135   :  { %v308_v29 = vadd.f32 %v307_v27, %v305_v28 }
 0x137   :  { %v311_v30 = vsel %vm310_vm1, %v308_v29, -inf }
 0x138   :  { %312 = vmax.xlane.f32.xlu0 %v311_v30 }
 0x13a   :  { %v302_v31 = vpop.f32.mrf.mxu3 }
 0x13b   :  { %v306_v32 = vmul.f32 0.17677669, %v302_v31 }
 0x13d   :  { %v309_v33 = vadd.f32 %v307_v27, %v306_v32 }
 0x13f   :  { %v314_v34 = vsel %vm310_vm1, %v309_v33, -inf }
 0x140   :  { %315 = vmax.xlane.f32.xlu0 %v314_v34 }
 0x1ab   :  { %v313_v36 = vpop.xlane.xlu0 %312 }
 0x1ac   :  { %v317_v37 = vsub.f32 %v308_v29, %v313_v36  ;;  %v431_v29 = vperm.slane %v905_v10, 4 }
 0x1ae   :  { %v319_v40 = vmul.f32 1.442695, %v317_v37 }
 0x1b0   :  { %559 = vpow2.f32 %v319_v40 }
 0x1b3   :  { %v316_v41 = vpop.xlane.xlu0 %315 }
 0x1b4   :  { %v318_v42 = vsub.f32 %v309_v33, %v316_v41 }
 0x1b6   :  { %v560_v45 = vpop.eup %559  ;;  %v321_v46 = vmul.f32 1.442695, %v318_v42 }
 0x1b7   :  { %v323_v47 = vsel %vm310_vm1, %v560_v45, 0.0 }
 0x1b8   :  { %561 = vpow2.f32 %v321_v46  ;;  %324 = vadd.xlane.f32.xlu1 %v323_v47 }
 0x1be   :  { %v562_v48 = vpop.eup %561 }
 0x1bf   :  { %v326_v49 = vsel %vm310_vm1, %v562_v48, 0.0 }
 0x1c0   :  { %327 = vadd.xlane.f32.xlu1 %v326_v49 }
 0x22b   :  { %v325_v50 = vpop.xlane.xlu1 %324 }
 0x22c   :  { %563 = vrcp.f32 %v325_v50 }
 0x232   :  { %v564_v51 = vpop.eup %563 }
 0x233   :  { %v331_v52 = vmul.f32 %v564_v51, %v560_v45  ;;  %v328_v53 = vpop.xlane.xlu1 %327 }
 0x234   :  { %565 = vrcp.f32 %v328_v53 }
 0x235   :  { %538 = vmatmul.msk.f32.vlgmr.msra.gmra.mxu3 %vm310_vm1, %v331_v52 }
 0x23a   :  { %v566_v54 = vpop.eup %565 }
 0x23b   :  { %v332_v55 = vmul.f32 %v566_v54, %v562_v48 }
 0x23d   :  { %539 = vmatmul.msk.f32.vlgmr.msrb.gmra.mxu0 %vm310_vm1, %v332_v55 }
 0x2b8   :  { %v353_v56 = vpop.f32.mrf.mxu3 }
 0x2b9   :  { %v382_v57 = vadd.f32 %v353_v56, %v193_v16 }
 0x2ba   :  { %v376_v58 = vpop.f32.mrf.mxu0 }
 0x2bb   :  { %384 = vadd.xlane.f32.xlu2 %v382_v57  ;;  %v383_v59 = vadd.f32 %v376_v58, %v195_v20 }
 0x2c3   :  { %386 = vadd.xlane.f32.xlu2 %v383_v59 }
 0x32e   :  { %v385_v62 = vpop.xlane.xlu2 %384 }
 0x32f   :  { %v388_v63 = vmul.f32 0.03125, %v385_v62 }
 0x331   :  { %v390_v0 = vsub.f32 %v382_v57, %v388_v63 }
 0x333   :  { %v394_v1 = vsel %vm381_vm2, %v390_v0, 0.0 }
 0x334   :  { %v396_v2 = vmul.f32 %v394_v1, %v394_v1 }
 0x336   :  { %398 = vadd.xlane.f32.xlu0 %v396_v2  ;;  %v387_v3 = vpop.xlane.xlu2 %386 }
 0x337   :  { %v389_v4 = vmul.f32 0.03125, %v387_v3 }
 0x339   :  { %v391_v5 = vsub.f32 %v383_v59, %v389_v4 }
 0x33b   :  { %v395_v6 = vsel %vm381_vm2, %v391_v5, 0.0  ;;  %v481_v5 = vperm.slane %v905_v10, 6 }
 0x33c   :  { %v397_v7 = vmul.f32 %v395_v6, %v395_v6 }
 0x33e   :  { %400 = vadd.xlane.f32.xlu1 %v397_v7 }
 0x3a9   :  { %v399_v8 = vpop.xlane.xlu0 %398 }
 0x3aa   :  { %v402_v9 = vmul.f32 0.03125, %v399_v8 }
 0x3ac   :  { %v404_v11 = vadd.f32 1e-05, %v402_v9 }
 0x3ae   :  { %567 = vrsqrt.f32 %v404_v11  ;;  %vm412_vm4 = vweird.f32 %v404_v11 }
 0x3b1   :  { %v401_v12 = vpop.xlane.xlu1 %400 }
 0x3b2   :  { %v403_v13 = vmul.f32 0.03125, %v401_v12 }
 0x3b4   :  { %v568_v14 = vpop.eup %567  ;;  %v405_v16 = vadd.f32 1e-05, %v403_v13 }
 0x3b5   :  { %v407_v17 = vmul.f32 %v568_v14, %v404_v11  ;;  %vm413_vm3 = vweird.f32 %v568_v14 }
 0x3b6   :  { %569 = vrsqrt.f32 %v405_v16  ;;  %vm414_vm5 = vmor %vm412_vm4, %vm413_vm3  ;;  %vm422_vm7 = vweird.f32 %v405_v16 }
 0x3b7   :  { %v408_v18 = vmul.f32 %v568_v14, %v407_v17 }
 0x3b9   :  { %v409_v20 = vmul.f32 0.5, %v408_v18 }
 0x3bb   :  { %v410_v21 = vsub.f32 1.5, %v409_v20 }
 0x3bc   :  { %v570_v22 = vpop.eup %569 }
 0x3bd   :  { %v411_v23 = vmul.f32 %v568_v14, %v410_v21  ;;  %v417_v24 = vmul.f32 %v570_v22, %v405_v16  ;;  %vm423_vm6 = vweird.f32 %v570_v22 }
 0x3be   :  { %vm424_vm8 = vmor %vm422_vm7, %vm423_vm6 }
 0x3bf   :  { %v418_v26 = vmul.f32 %v570_v22, %v417_v24  ;;  %v415_v27 = vsel %vm414_vm5, %v568_v14, %v411_v23 }
 0x3c0   :  { %v426_v28 = vmul.f32 %v415_v27, %v394_v1  ;;  %v478_v1 = vperm.slane %v905_v10, 5 }
 0x3c1   :  { %v419_v30 = vmul.f32 0.5, %v418_v26 }
 0x3c2   :  { %v429_v31 = vmul.f32 %v428_v25, %v426_v28 }
 0x3c3   :  { %v420_v32 = vsub.f32 1.5, %v419_v30 }
 0x3c4   :  { %v432_v33 = vadd.f32 %v431_v29, %v429_v31 }
 0x3c5   :  { %v421_v34 = vmul.f32 %v570_v22, %v420_v32 }
 0x3c6   :  { %v434_v35 = vadd.f32 %v432_v33, %v909_v15 }
 0x3c7   :  { %v425_v36 = vsel %vm424_vm8, %v570_v22, %v421_v34 }
 0x3c8   :  { %436 = vadd.xlane.f32.xlu2 %v434_v35  ;;  %v427_v37 = vmul.f32 %v425_v36, %v395_v6 }
 0x3ca   :  { %v430_v38 = vmul.f32 %v428_v25, %v427_v37 }
 0x3cc   :  { %v433_v40 = vadd.f32 %v431_v29, %v430_v38 }
 0x3ce   :  { %v435_v41 = vadd.f32 %v433_v40, %v912_v19 }
 0x3d0   :  { %438 = vadd.xlane.f32.xlu0 %v435_v41 }
 0x43b   :  { %v437_v42 = vpop.xlane.xlu2 %436 }
 0x43c   :  { %v440_v43 = vmul.f32 0.03125, %v437_v42 }
 0x43e   :  { %v442_v45 = vsub.f32 %v434_v35, %v440_v43 }
 0x440   :  { %v444_v46 = vsel %vm381_vm2, %v442_v45, 0.0 }
 0x441   :  { %v446_v47 = vmul.f32 %v444_v46, %v444_v46 }
 0x443   :  { %448 = vadd.xlane.f32.xlu1 %v446_v47  ;;  %v439_v48 = vpop.xlane.xlu0 %438 }
 0x444   :  { %v441_v49 = vmul.f32 0.03125, %v439_v48 }
 0x446   :  { %v443_v50 = vsub.f32 %v435_v41, %v441_v49 }
 0x448   :  { %v445_v15 = vsel %vm381_vm2, %v443_v50, 0.0 }
 0x449   :  { %v447_v51 = vmul.f32 %v445_v15, %v445_v15 }
 0x44b   :  { %450 = vadd.xlane.f32.xlu2 %v447_v51 }
 0x4b6   :  { %v449_v52 = vpop.xlane.xlu1 %448 }
 0x4b7   :  { %v452_v53 = vmul.f32 0.03125, %v449_v52 }
 0x4b9   :  { %v454_v19 = vadd.f32 1e-05, %v452_v53 }
 0x4bb   :  { %571 = vrsqrt.f32 %v454_v19  ;;  %vm462_vm10 = vweird.f32 %v454_v19 }
 0x4be   :  { %v451_v54 = vpop.xlane.xlu2 %450 }
 0x4bf   :  { %v453_v55 = vmul.f32 0.03125, %v451_v54 }
 0x4c1   :  { %v572_v56 = vpop.eup %571  ;;  %v455_v57 = vadd.f32 1e-05, %v453_v55 }
 0x4c2   :  { %v457_v58 = vmul.f32 %v572_v56, %v454_v19  ;;  %vm463_vm9 = vweird.f32 %v572_v56 }
 0x4c3   :  { %573 = vrsqrt.f32 %v455_v57  ;;  %vm464_vm11 = vmor %vm462_vm10, %vm463_vm9  ;;  %vm472_vm13 = vweird.f32 %v455_v57 }
 0x4c4   :  { %v458_v59 = vmul.f32 %v572_v56, %v457_v58 }
 0x4c6   :  { %v459_v60 = vmul.f32 0.5, %v458_v59 }
 0x4c8   :  { %v460_v62 = vsub.f32 1.5, %v459_v60 }
 0x4c9   :  { %v574_v63 = vpop.eup %573 }
 0x4ca   :  { %v461_v0 = vmul.f32 %v572_v56, %v460_v62  ;;  %v467_v61 = vmul.f32 %v574_v63, %v455_v57  ;;  %vm473_vm12 = vweird.f32 %v574_v63 }
 0x4cb   :  { %vm474_vm14 = vmor %vm472_vm13, %vm473_vm12 }
 0x4cc   :  { %v465_v2 = vsel %vm464_vm11, %v572_v56, %v461_v0  ;;  %v468_v3 = vmul.f32 %v574_v63, %v467_v61 }
 0x4cd   :  { %v476_v4 = vmul.f32 %v465_v2, %v444_v46 }
 0x4ce   :  { %v469_v6 = vmul.f32 0.5, %v468_v3 }
 0x4cf   :  { %v479_v7 = vmul.f32 %v478_v1, %v476_v4 }
 0x4d0   :  { %v470_v8 = vsub.f32 1.5, %v469_v6 }
 0x4d1   :  { %v482_v9 = vadd.f32 %v481_v5, %v479_v7 }
 0x4d2   :  { %v471_v11 = vmul.f32 %v574_v63, %v470_v8 }
 0x4d3   :  { %v484_v12 = vadd.f32 %v482_v9, %v919_v39 }
 0x4d4   :  { %v475_v13 = vsel %vm474_vm14, %v574_v63, %v471_v11 }
 0x4d5   :  { %v477_v14 = vmul.f32 %v475_v13, %v445_v15  ;;  %486 = vst [vmem:[#allocation16] sm:$0xff] %v484_v12 }
 0x4d7   :  { %v480_v16 = vmul.f32 %v478_v1, %v477_v14 }
 0x4d9   :  { %v483_v10 = vadd.f32 %v481_v5, %v480_v16 }
 0x4db   :  { %v485_v17 = vadd.f32 %v483_v10, %v922_v44 }
 0x4dd   :  { %487 = vst [vmem:[#allocation16 + $0x8] sm:$0xff] %v485_v17 }
 0x4de   :  { %500 = dma.vmem_to_hbm [thread:$0]  %s493_s3, 256, %s495_s23, [#allocation4], %s804_s13, %s804_s13, %s805_s14  }
 0x4df   :  { %801 = dma.done.wait [#allocation4], 256  }
 0x4e0   :  { %802 = vsyncadd [#allocation4], 4294967040 }
 0x4e1   :  { %505 = vsyncpa [#allocation3], 1 }
 0x4e2   :  { %506 = vsyncpa [#allocation6], 1 }
 0x4e3   :  { %507 = vsyncpa [#allocation9], 1 }
 0x4e4   :  { %508 = vsyncpa [#allocation12], 1 }
 0x4e5   :  { %509 = vsyncpa [#allocation15], 1 }
 0x4e6   :  { %510 = vsyncpa [#allocation4], 1 }

</bundles_post_ra>
